<compile_context>
chip_gen: v6e
topology: v6e:2x2x1
jax: 0.10.0
libtpu: 0.0.40
codegen_flags: <defaults>
</compile_context>

<pallas_src>
import jax
import jax.numpy as jnp
from jax.experimental import pallas as pl
from jax.experimental.pallas import tpu as pltpu

PAD_OUT = 128   # fc8 output (1) zero-padded to 128 so the output slab is lane-dense
MAX_TB = 512    # max batch-tile rows (review: larger tiles pay off on v6e)


def _round_up(x, m):
    return ((x + m - 1) // m) * m


def _cdiv(a, b):
    return -(-a // b)


# --------------------------------------------------------------------------
# Kernel: one batch tile runs all 8 layers with VMEM-resident weights.
# --------------------------------------------------------------------------
def _critic_kernel(x_ref,
                   w1, w2, w3, w4, w5, w6, w7, w8,
                   b_all,
                   out_ref):
    """7x (Linear -> ReLU) then Linear (output padded to 128 lanes)."""
    h = x_ref[...].astype(jnp.float32)

    ws = (w1, w2, w3, w4, w5, w6, w7)
    for k in range(7):
        w = ws[k]
        out_dim = w.shape[1]
        # bf16 operands, f32 accumulation on the MXU; bias row k, static slice.
        y = jnp.dot(h.astype(w.dtype), w[...],
                    preferred_element_type=jnp.float32)
        y = y + b_all[k:k + 1, :out_dim]
        h = jnp.maximum(y, 0.0)

    # Final layer, no activation. Padded columns are exactly zero (zero weight
    # columns, zero bias) so slicing column 0 outside the kernel is exact.
    v = jnp.dot(h.astype(w8.dtype), w8[...],
                preferred_element_type=jnp.float32)
    v = v + b_all[7:8, :w8.shape[1]]
    out_ref[...] = v.astype(out_ref.dtype)   # bf16 store -> half the writeback


# --------------------------------------------------------------------------
# Parameter init / prep
# --------------------------------------------------------------------------
def init_critic_params(key, input_dim, hidden_dim=512, dtype=jnp.float32):
    """Deterministic init mimicking nn.Linear's U(-1/sqrt(fan_in), 1/sqrt(fan_in))."""
    dims = [input_dim] + [hidden_dim] * 7 + [1]
    params = []
    for i in range(8):
        fan_in, fan_out = dims[i], dims[i + 1]
        key, kw, kb = jax.random.split(key, 3)
        bound = 1.0 / (fan_in ** 0.5)
        w = jax.random.uniform(kw, (fan_in, fan_out), dtype, -bound, bound)
        b = jax.random.uniform(kb, (fan_out,), dtype, -bound, bound)
        params.append((w, b))
    return params


def prepare_critic_params(params, weight_dtype=jnp.bfloat16):
    """One-time parameter prep (outside the per-step hot path):
       - cast all weights to bf16 (halves weight DMA, MXU-native)
       - pack all 8 biases into one (8, bias_pad) f32 slab
       - zero-pad fc8 weight to a lane-dense (hidden, 128) slab.
       Returns (w1..w8, b_all).
    """
    hidden_dim = params[1][0].shape[0]
    bias_pad = _round_up(max(hidden_dim, PAD_OUT), 128)

    ws = []
    b_all = jnp.zeros((8, bias_pad), jnp.float32)
    for i in range(7):
        w, b = params[i]
        ws.append(w.astype(weight_dtype))
        b_all = b_all.at[i, :b.shape[0]].set(b.astype(jnp.float32))

    w8, b8 = params[7]
    w8p = jnp.zeros((hidden_dim, PAD_OUT), weight_dtype).at[:, :1].set(
        w8.astype(weight_dtype))
    ws.append(w8p)
    b_all = b_all.at[7, :1].set(b8.astype(jnp.float32))
    return tuple(ws) + (b_all,)


def _choose_batch_tile(batch):
    """Pick (tb, padded_batch):
       - >= 2 tiles whenever batch >= 16 so v7x's two TCs both get work,
       - tiles capped at MAX_TB,
       - tb sized from cdiv(batch, num_tiles) so the last tile is never
         mostly padding (avoids the near-2x pad blowup)."""
    min_tiles = 2 if batch >= 16 else 1
    num_tiles = max(_cdiv(batch, MAX_TB), min_tiles)
    tb = _round_up(_cdiv(batch, num_tiles), 8)
    padded_batch = _round_up(batch, tb)
    return tb, padded_batch


# --------------------------------------------------------------------------
# Forward
# --------------------------------------------------------------------------
@jax.jit
def critic_forward(x, prepped):
    """x: (batch, input_dim) f32, prepped: prepare_critic_params(...) -> (batch, 1) f32."""
    batch, input_dim = x.shape
    hidden_dim = prepped[1].shape[0]   # w2 is (hidden, hidden)

    tb, padded_batch = _choose_batch_tile(batch)
    if padded_batch != batch:
        x = jnp.pad(x, ((0, padded_batch - batch), (0, 0)))
    grid = (padded_batch // tb,)

    x_spec = pl.BlockSpec((tb, input_dim), lambda i: (i, 0))

    def resident(shape):
        # Constant index_map -> VMEM-resident across grid steps; Buffered(1)
        # drops the never-used second pipeline buffer (halves weight VMEM).
        return pl.BlockSpec(shape, lambda i: (0, 0), pipeline_mode=pl.Buffered(1))

    in_specs = [x_spec] + [resident(a.shape) for a in prepped]
    out_spec = pl.BlockSpec((tb, PAD_OUT), lambda i: (i, 0))

    # Cost estimate for XLA scheduling.
    dims_in = [input_dim] + [hidden_dim] * 7
    dims_out = [hidden_dim] * 7 + [PAD_OUT]
    flops = 2 * padded_batch * sum(a * b for a, b in zip(dims_in, dims_out))
    param_bytes = sum(a.size * a.dtype.itemsize for a in prepped)
    bytes_accessed = (x.size * x.dtype.itemsize
                      + param_bytes
                      + padded_batch * PAD_OUT * 2)   # bf16 output slab

    # Explicit scoped-VMEM budget: single-buffered weights/biases,
    # double-buffered x and out tiles, a few f32 intermediates, plus slack.
    working_set = (param_bytes
                   + 2 * tb * input_dim * 4
                   + 2 * tb * PAD_OUT * 2
                   + 4 * tb * hidden_dim * 4)
    vmem_limit = int(1.5 * working_set) + (2 << 20)
    vmem_limit = min(max(vmem_limit, 16 << 20), 64 << 20)

    out_padded = pl.pallas_call(
        _critic_kernel,
        out_shape=jax.ShapeDtypeStruct((padded_batch, PAD_OUT), jnp.bfloat16),
        grid=grid,
        in_specs=in_specs,
        out_specs=out_spec,
        compiler_params=pltpu.CompilerParams(
            dimension_semantics=("parallel",),
            vmem_limit_bytes=vmem_limit),
        cost_estimate=pl.CostEstimate(flops=flops, transcendentals=0,
                                      bytes_accessed=bytes_accessed),
    )(x, *prepped)

    return out_padded[:batch, :1].astype(jnp.float32)


def critic_forward_ref(x, prepped):
    """Pure-JAX reference with the same numerics (bf16 operands, f32 accum,
       bf16 output quantization)."""
    ws, b_all = prepped[:8], prepped[8]
    h = x.astype(jnp.float32)
    for k in range(7):
        w = ws[k]
        y = jnp.dot(h.astype(w.dtype), w, preferred_element_type=jnp.float32)
        y = y + b_all[k:k + 1, :w.shape[1]]
        h = jnp.maximum(y, 0.0)
    w8 = ws[7]
    v = jnp.dot(h.astype(w8.dtype), w8, preferred_element_type=jnp.float32)
    v = v + b_all[7:8, :w8.shape[1]]
    return v[:, :1].astype(jnp.bfloat16).astype(jnp.float32)


if __name__ == "__main__":
    key = jax.random.PRNGKey(0)
    input_dim, hidden_dim = 32, 128

    kx, kx2, kp = jax.random.split(key, 3)
    params = init_critic_params(kp, input_dim, hidden_dim)
    prepped = prepare_critic_params(params)

    # Torch-style full-f32 forward (loose check: kernel intentionally uses
    # bf16 weights + bf16 output quantization).
    def torch_style(x):
        h = x
        for i in range(7):
            w, b = params[i]
            h = jnp.maximum(h @ w + b, 0.0)
        return h @ params[7][0] + params[7][1]

    # --- small batch (single tile, grid=(1,)) ---
    x = jax.random.normal(kx, (8, input_dim), jnp.float32)
    out = jax.block_until_ready(critic_forward(x, prepped))
    assert out.shape == (8, 1), out.shape
    ref = critic_forward_ref(x, prepped)
    assert jnp.allclose(out, ref, atol=2e-2, rtol=2e-2), (out, ref)
    assert jnp.allclose(out, torch_style(x), atol=1e-1, rtol=1e-1)

    # --- batch that needs padding + multi-tile grid (exercises grid=(2,)) ---
    x2 = jax.random.normal(kx2, (20, input_dim), jnp.float32)
    out2 = jax.block_until_ready(critic_forward(x2, prepped))
    assert out2.shape == (20, 1), out2.shape
    ref2 = critic_forward_ref(x2, prepped)
    assert jnp.allclose(out2, ref2, atol=2e-2, rtol=2e-2), (out2, ref2)
    assert jnp.allclose(out2, torch_style(x2), atol=1e-1, rtol=1e-1)

    print("KERNEL_OK")
</pallas_src>

<mosaic_0001>
module attributes {stable_mosaic.version = 11 : i64} {
  func.func @_critic_kernel(%arg0: i32, %arg1: memref<8x32xf32, #tpu.memory_space<vmem>>, %arg2: memref<32x128xbf16, #tpu.memory_space<vmem>>, %arg3: memref<128x128xbf16, #tpu.memory_space<vmem>>, %arg4: memref<128x128xbf16, #tpu.memory_space<vmem>>, %arg5: memref<128x128xbf16, #tpu.memory_space<vmem>>, %arg6: memref<128x128xbf16, #tpu.memory_space<vmem>>, %arg7: memref<128x128xbf16, #tpu.memory_space<vmem>>, %arg8: memref<128x128xbf16, #tpu.memory_space<vmem>>, %arg9: memref<128x128xbf16, #tpu.memory_space<vmem>>, %arg10: memref<8x128xf32, #tpu.memory_space<vmem>>, %arg11: memref<8x128xbf16, #tpu.memory_space<vmem>>) attributes {dimension_semantics = [#tpu.dimension_semantics<parallel>], iteration_bounds = array<i64: 1>, scalar_prefetch = 0 : i64, scratch_operands = 0 : i64, tpu.core_type = #tpu.core_type<tc>, window_params = [{transform_indices = @transform_0, window_bounds = array<i64: 8, 32>}, {pipeline_mode = #tpu.pipeline_mode<synchronous>, transform_indices = @transform_1, window_bounds = array<i64: 32, 128>}, {pipeline_mode = #tpu.pipeline_mode<synchronous>, transform_indices = @transform_2, window_bounds = array<i64: 128, 128>}, {pipeline_mode = #tpu.pipeline_mode<synchronous>, transform_indices = @transform_3, window_bounds = array<i64: 128, 128>}, {pipeline_mode = #tpu.pipeline_mode<synchronous>, transform_indices = @transform_4, window_bounds = array<i64: 128, 128>}, {pipeline_mode = #tpu.pipeline_mode<synchronous>, transform_indices = @transform_5, window_bounds = array<i64: 128, 128>}, {pipeline_mode = #tpu.pipeline_mode<synchronous>, transform_indices = @transform_6, window_bounds = array<i64: 128, 128>}, {pipeline_mode = #tpu.pipeline_mode<synchronous>, transform_indices = @transform_7, window_bounds = array<i64: 128, 128>}, {pipeline_mode = #tpu.pipeline_mode<synchronous>, transform_indices = @transform_8, window_bounds = array<i64: 128, 128>}, {pipeline_mode = #tpu.pipeline_mode<synchronous>, transform_indices = @transform_9, window_bounds = array<i64: 8, 128>}, {transform_indices = @transform_10, window_bounds = array<i64: 8, 128>}]} {
    %c0 = arith.constant 0 : index
    %c0_0 = arith.constant 0 : index
    %0 = vector.load %arg1[%c0, %c0_0] : memref<8x32xf32, #tpu.memory_space<vmem>>, vector<8x32xf32>
    %1 = arith.truncf %0 : vector<8x32xf32> to vector<8x32xbf16>
    %c0_1 = arith.constant 0 : index
    %c0_2 = arith.constant 0 : index
    %2 = vector.load %arg2[%c0_1, %c0_2] : memref<32x128xbf16, #tpu.memory_space<vmem>>, vector<32x128xbf16>
    %cst = arith.constant dense<0.000000e+00> : vector<8x128xf32>
    %3 = tpu.matmul %1, %2, %cst {dimension_numbers = #tpu.dot_dimension_numbers<[1], [0], [0], [1], [0, 0, 1, 1], [], []>} : vector<8x32xbf16>, vector<32x128xbf16>, vector<8x128xf32> -> vector<8x128xf32>
    %c0_3 = arith.constant 0 : index
    %c0_4 = arith.constant 0 : index
    %4 = vector.load %arg10[%c0_3, %c0_4] : memref<8x128xf32, #tpu.memory_space<vmem>>, vector<1x128xf32>
    %5 = vector.broadcast %4 : vector<1x128xf32> to vector<8x128xf32>
    %6 = arith.addf %3, %5 : vector<8x128xf32>
    %cst_5 = arith.constant 0.000000e+00 : f32
    %7 = vector.broadcast %cst_5 : f32 to vector<8x128xf32>
    %8 = arith.maximumf %6, %7 : vector<8x128xf32>
    %9 = arith.truncf %8 : vector<8x128xf32> to vector<8x128xbf16>
    %c0_6 = arith.constant 0 : index
    %c0_7 = arith.constant 0 : index
    %10 = vector.load %arg3[%c0_6, %c0_7] : memref<128x128xbf16, #tpu.memory_space<vmem>>, vector<128x128xbf16>
    %cst_8 = arith.constant dense<0.000000e+00> : vector<8x128xf32>
    %11 = tpu.matmul %9, %10, %cst_8 {dimension_numbers = #tpu.dot_dimension_numbers<[1], [0], [0], [1], [0, 0, 1, 1], [], []>} : vector<8x128xbf16>, vector<128x128xbf16>, vector<8x128xf32> -> vector<8x128xf32>
    %c1 = arith.constant 1 : index
    %c0_9 = arith.constant 0 : index
    %12 = vector.load %arg10[%c1, %c0_9] : memref<8x128xf32, #tpu.memory_space<vmem>>, vector<1x128xf32>
    %13 = vector.broadcast %12 : vector<1x128xf32> to vector<8x128xf32>
    %14 = arith.addf %11, %13 : vector<8x128xf32>
    %cst_10 = arith.constant 0.000000e+00 : f32
    %15 = vector.broadcast %cst_10 : f32 to vector<8x128xf32>
    %16 = arith.maximumf %14, %15 : vector<8x128xf32>
    %17 = arith.truncf %16 : vector<8x128xf32> to vector<8x128xbf16>
    %c0_11 = arith.constant 0 : index
    %c0_12 = arith.constant 0 : index
    %18 = vector.load %arg4[%c0_11, %c0_12] : memref<128x128xbf16, #tpu.memory_space<vmem>>, vector<128x128xbf16>
    %cst_13 = arith.constant dense<0.000000e+00> : vector<8x128xf32>
    %19 = tpu.matmul %17, %18, %cst_13 {dimension_numbers = #tpu.dot_dimension_numbers<[1], [0], [0], [1], [0, 0, 1, 1], [], []>} : vector<8x128xbf16>, vector<128x128xbf16>, vector<8x128xf32> -> vector<8x128xf32>
    %c2 = arith.constant 2 : index
    %c0_14 = arith.constant 0 : index
    %20 = vector.load %arg10[%c2, %c0_14] : memref<8x128xf32, #tpu.memory_space<vmem>>, vector<1x128xf32>
    %21 = vector.broadcast %20 : vector<1x128xf32> to vector<8x128xf32>
    %22 = arith.addf %19, %21 : vector<8x128xf32>
    %cst_15 = arith.constant 0.000000e+00 : f32
    %23 = vector.broadcast %cst_15 : f32 to vector<8x128xf32>
    %24 = arith.maximumf %22, %23 : vector<8x128xf32>
    %25 = arith.truncf %24 : vector<8x128xf32> to vector<8x128xbf16>
    %c0_16 = arith.constant 0 : index
    %c0_17 = arith.constant 0 : index
    %26 = vector.load %arg5[%c0_16, %c0_17] : memref<128x128xbf16, #tpu.memory_space<vmem>>, vector<128x128xbf16>
    %cst_18 = arith.constant dense<0.000000e+00> : vector<8x128xf32>
    %27 = tpu.matmul %25, %26, %cst_18 {dimension_numbers = #tpu.dot_dimension_numbers<[1], [0], [0], [1], [0, 0, 1, 1], [], []>} : vector<8x128xbf16>, vector<128x128xbf16>, vector<8x128xf32> -> vector<8x128xf32>
    %c3 = arith.constant 3 : index
    %c0_19 = arith.constant 0 : index
    %28 = vector.load %arg10[%c3, %c0_19] : memref<8x128xf32, #tpu.memory_space<vmem>>, vector<1x128xf32>
    %29 = vector.broadcast %28 : vector<1x128xf32> to vector<8x128xf32>
    %30 = arith.addf %27, %29 : vector<8x128xf32>
    %cst_20 = arith.constant 0.000000e+00 : f32
    %31 = vector.broadcast %cst_20 : f32 to vector<8x128xf32>
    %32 = arith.maximumf %30, %31 : vector<8x128xf32>
    %33 = arith.truncf %32 : vector<8x128xf32> to vector<8x128xbf16>
    %c0_21 = arith.constant 0 : index
    %c0_22 = arith.constant 0 : index
    %34 = vector.load %arg6[%c0_21, %c0_22] : memref<128x128xbf16, #tpu.memory_space<vmem>>, vector<128x128xbf16>
    %cst_23 = arith.constant dense<0.000000e+00> : vector<8x128xf32>
    %35 = tpu.matmul %33, %34, %cst_23 {dimension_numbers = #tpu.dot_dimension_numbers<[1], [0], [0], [1], [0, 0, 1, 1], [], []>} : vector<8x128xbf16>, vector<128x128xbf16>, vector<8x128xf32> -> vector<8x128xf32>
    %c4 = arith.constant 4 : index
    %c0_24 = arith.constant 0 : index
    %36 = vector.load %arg10[%c4, %c0_24] : memref<8x128xf32, #tpu.memory_space<vmem>>, vector<1x128xf32>
    %37 = vector.broadcast %36 : vector<1x128xf32> to vector<8x128xf32>
    %38 = arith.addf %35, %37 : vector<8x128xf32>
    %cst_25 = arith.constant 0.000000e+00 : f32
    %39 = vector.broadcast %cst_25 : f32 to vector<8x128xf32>
    %40 = arith.maximumf %38, %39 : vector<8x128xf32>
    %41 = arith.truncf %40 : vector<8x128xf32> to vector<8x128xbf16>
    %c0_26 = arith.constant 0 : index
    %c0_27 = arith.constant 0 : index
    %42 = vector.load %arg7[%c0_26, %c0_27] : memref<128x128xbf16, #tpu.memory_space<vmem>>, vector<128x128xbf16>
    %cst_28 = arith.constant dense<0.000000e+00> : vector<8x128xf32>
    %43 = tpu.matmul %41, %42, %cst_28 {dimension_numbers = #tpu.dot_dimension_numbers<[1], [0], [0], [1], [0, 0, 1, 1], [], []>} : vector<8x128xbf16>, vector<128x128xbf16>, vector<8x128xf32> -> vector<8x128xf32>
    %c5 = arith.constant 5 : index
    %c0_29 = arith.constant 0 : index
    %44 = vector.load %arg10[%c5, %c0_29] : memref<8x128xf32, #tpu.memory_space<vmem>>, vector<1x128xf32>
    %45 = vector.broadcast %44 : vector<1x128xf32> to vector<8x128xf32>
    %46 = arith.addf %43, %45 : vector<8x128xf32>
    %cst_30 = arith.constant 0.000000e+00 : f32
    %47 = vector.broadcast %cst_30 : f32 to vector<8x128xf32>
    %48 = arith.maximumf %46, %47 : vector<8x128xf32>
    %49 = arith.truncf %48 : vector<8x128xf32> to vector<8x128xbf16>
    %c0_31 = arith.constant 0 : index
    %c0_32 = arith.constant 0 : index
    %50 = vector.load %arg8[%c0_31, %c0_32] : memref<128x128xbf16, #tpu.memory_space<vmem>>, vector<128x128xbf16>
    %cst_33 = arith.constant dense<0.000000e+00> : vector<8x128xf32>
    %51 = tpu.matmul %49, %50, %cst_33 {dimension_numbers = #tpu.dot_dimension_numbers<[1], [0], [0], [1], [0, 0, 1, 1], [], []>} : vector<8x128xbf16>, vector<128x128xbf16>, vector<8x128xf32> -> vector<8x128xf32>
    %c6 = arith.constant 6 : index
    %c0_34 = arith.constant 0 : index
    %52 = vector.load %arg10[%c6, %c0_34] : memref<8x128xf32, #tpu.memory_space<vmem>>, vector<1x128xf32>
    %53 = vector.broadcast %52 : vector<1x128xf32> to vector<8x128xf32>
    %54 = arith.addf %51, %53 : vector<8x128xf32>
    %cst_35 = arith.constant 0.000000e+00 : f32
    %55 = vector.broadcast %cst_35 : f32 to vector<8x128xf32>
    %56 = arith.maximumf %54, %55 : vector<8x128xf32>
    %57 = arith.truncf %56 : vector<8x128xf32> to vector<8x128xbf16>
    %c0_36 = arith.constant 0 : index
    %c0_37 = arith.constant 0 : index
    %58 = vector.load %arg9[%c0_36, %c0_37] : memref<128x128xbf16, #tpu.memory_space<vmem>>, vector<128x128xbf16>
    %cst_38 = arith.constant dense<0.000000e+00> : vector<8x128xf32>
    %59 = tpu.matmul %57, %58, %cst_38 {dimension_numbers = #tpu.dot_dimension_numbers<[1], [0], [0], [1], [0, 0, 1, 1], [], []>} : vector<8x128xbf16>, vector<128x128xbf16>, vector<8x128xf32> -> vector<8x128xf32>
    %c7 = arith.constant 7 : index
    %c0_39 = arith.constant 0 : index
    %60 = vector.load %arg10[%c7, %c0_39] : memref<8x128xf32, #tpu.memory_space<vmem>>, vector<1x128xf32>
    %61 = vector.broadcast %60 : vector<1x128xf32> to vector<8x128xf32>
    %62 = arith.addf %59, %61 : vector<8x128xf32>
    %63 = arith.truncf %62 : vector<8x128xf32> to vector<8x128xbf16>
    %c0_40 = arith.constant 0 : index
    %c0_41 = arith.constant 0 : index
    %64 = vector.load %arg11[%c0_40, %c0_41] : memref<8x128xbf16, #tpu.memory_space<vmem>>, vector<8x128xbf16>
    tpu.vector_store %arg11[%c0_40, %c0_41], %63 {strides = array<i32>} : memref<8x128xbf16, #tpu.memory_space<vmem>>, vector<8x128xbf16>,
    return
  }
  func.func @transform_0(%arg0: i32) -> (i32, i32) {
    %c0_i32 = arith.constant 0 : i32
    %c0_i32_0 = arith.constant 0 : i32
    return %arg0, %c0_i32 : i32, i32
  }
  func.func @transform_1(%arg0: i32) -> (i32, i32) {
    %c0_i32 = arith.constant 0 : i32
    %c0_i32_0 = arith.constant 0 : i32
    %c0_i32_1 = arith.constant 0 : i32
    return %c0_i32, %c0_i32_0 : i32, i32
  }
  func.func @transform_2(%arg0: i32) -> (i32, i32) {
    %c0_i32 = arith.constant 0 : i32
    %c0_i32_0 = arith.constant 0 : i32
    %c0_i32_1 = arith.constant 0 : i32
    return %c0_i32, %c0_i32_0 : i32, i32
  }
  func.func @transform_3(%arg0: i32) -> (i32, i32) {
    %c0_i32 = arith.constant 0 : i32
    %c0_i32_0 = arith.constant 0 : i32
    %c0_i32_1 = arith.constant 0 : i32
    return %c0_i32, %c0_i32_0 : i32, i32
  }
  func.func @transform_4(%arg0: i32) -> (i32, i32) {
    %c0_i32 = arith.constant 0 : i32
    %c0_i32_0 = arith.constant 0 : i32
    %c0_i32_1 = arith.constant 0 : i32
    return %c0_i32, %c0_i32_0 : i32, i32
  }
  func.func @transform_5(%arg0: i32) -> (i32, i32) {
    %c0_i32 = arith.constant 0 : i32
    %c0_i32_0 = arith.constant 0 : i32
    %c0_i32_1 = arith.constant 0 : i32
    return %c0_i32, %c0_i32_0 : i32, i32
  }
  func.func @transform_6(%arg0: i32) -> (i32, i32) {
    %c0_i32 = arith.constant 0 : i32
    %c0_i32_0 = arith.constant 0 : i32
    %c0_i32_1 = arith.constant 0 : i32
    return %c0_i32, %c0_i32_0 : i32, i32
  }
  func.func @transform_7(%arg0: i32) -> (i32, i32) {
    %c0_i32 = arith.constant 0 : i32
    %c0_i32_0 = arith.constant 0 : i32
    %c0_i32_1 = arith.constant 0 : i32
    return %c0_i32, %c0_i32_0 : i32, i32
  }
  func.func @transform_8(%arg0: i32) -> (i32, i32) {
    %c0_i32 = arith.constant 0 : i32
    %c0_i32_0 = arith.constant 0 : i32
    %c0_i32_1 = arith.constant 0 : i32
    return %c0_i32, %c0_i32_0 : i32, i32
  }
  func.func @transform_9(%arg0: i32) -> (i32, i32) {
    %c0_i32 = arith.constant 0 : i32
    %c0_i32_0 = arith.constant 0 : i32
    %c0_i32_1 = arith.constant 0 : i32
    return %c0_i32, %c0_i32_0 : i32, i32
  }
  func.func @transform_10(%arg0: i32) -> (i32, i32) {
    %c0_i32 = arith.constant 0 : i32
    %c0_i32_0 = arith.constant 0 : i32
    return %arg0, %c0_i32 : i32, i32
  }
}

</mosaic_0001>

<bundles_post_ra>
// kernel: critic_forward.1
= control target key start
LH: loop header
LB: loop body
LE: loop exit
PB: predicated region body
PF: predicated region fallthrough
CT: control target
= control target key end

     0   :  { %15 = vsyncpa [#allocation3], 0  ;;  %s1773_s0 = inlined_call_operand.hbm [shape: f32[8,32], index: 0, kind: input, shape index: {}]   ;;  %s1774_s1 = inlined_call_operand.hbm [shape: bf16[32,128], index: 1, kind: input, shape index: {}]   ;;  %s1775_s2 = inlined_call_operand.hbm [shape: bf16[128,128], index: 2, kind: input, shape index: {}]   ;;  %s1776_s3 = inlined_call_operand.hbm [shape: bf16[128,128], index: 3, kind: input, shape index: {}]   ;;  %s1777_s4 = inlined_call_operand.hbm [shape: bf16[128,128], index: 4, kind: input, shape index: {}]   ;;  %s1778_s5 = inlined_call_operand.hbm [shape: bf16[128,128], index: 5, kind: input, shape index: {}]   ;;  %s1779_s6 = inlined_call_operand.hbm [shape: bf16[128,128], index: 6, kind: input, shape index: {}]   ;;  %s1780_s7 = inlined_call_operand.hbm [shape: bf16[128,128], index: 7, kind: input, shape index: {}]   ;;  %s1781_s8 = inlined_call_operand.hbm [shape: bf16[128,128], index: 8, kind: input, shape index: {}]   ;;  %s1782_s9 = inlined_call_operand.vmem [shape: f32[8,128], index: 9, kind: input, shape index: {}]   ;;  %s1783_s10 = inlined_call_operand.vmem [shape: bf16[8,128], index: 10, kind: output, shape index: {}]  }
   0x1   :  { %16 = vsyncpa [#allocation5], 0 }
   0x2   :  { %17 = vsyncpa [#allocation8], 0 }
   0x3   :  { %18 = vsyncpa [#allocation11], 0 }
   0x4   :  { %19 = vsyncpa [#allocation14], 0  ;;  %s1553_s13 = smov [#allocation4]  }
   0x5   :  { %s35_s14 = sshll.u32 %s1553_s13, 4  ;;  %s36_s14 = int_to_ptr.vmem [resolvable:$true] %s35_s14 }
   0x6   :  { %s1371_s15 = scalar_lea.vmem %s36_s14, 256  ;;  %p1376_p1 = scmp.lt.s32.totalorder %s36_s14, %s36_s14 }
   0x7   :  { %p1372_p0 = scmp.ne.s32.totalorder %s36_s14, %s1371_s15  ;;  %p1377_p2 = scmp.lt.s32.totalorder %s1371_s15, %s1371_s15 }
   0x9   :  { %p1378_p3 = por %p1377_p2, %p1376_p1 }
   0xb   :  { %p1379_p4 = pnand %p1378_p3, %p1372_p0 }
   0xd   :  { %1382 = shalt.err (!%p1379_p4)
}
   0xe   :  { %s1554_s16 = smov 64   ;;  %s1555_s17 = smov 4  }
   0xf   :  { %41 = dma.hbm_to_vmem [thread:$0]  %s1774_s1, 256, %s36_s14, [#allocation5], %s1554_s16, %s1554_s16, %s1555_s17  }
  0x10   :  { %s1556_s20 = smov [#allocation7]   ;;  %s1557_s22 = smov [#allocation10]  }
  0x11   :  { %s59_s21 = sshll.u32 %s1556_s20, 4  ;;  %s83_s23 = sshll.u32 %s1557_s22, 4  ;;  %s60_s21 = int_to_ptr.vmem [resolvable:$true] %s59_s21  ;;  %s84_s23 = int_to_ptr.vmem [resolvable:$true] %s83_s23 }
  0x12   :  { %s1391_s24 = scalar_lea.vmem %s60_s21, 1024  ;;  %p1396_p6 = scmp.lt.s32.totalorder %s60_s21, %s60_s21 }
  0x13   :  { %p1392_p5 = scmp.ne.s32.totalorder %s60_s21, %s1391_s24  ;;  %p1397_p7 = scmp.lt.s32.totalorder %s1391_s24, %s1391_s24 }
  0x15   :  { %p1398_p8 = por %p1397_p7, %p1396_p6 }
  0x17   :  { %p1399_p9 = pnand %p1398_p8, %p1392_p5 }
  0x19   :  { %1402 = shalt.err (!%p1399_p9)
}
  0x1a   :  { %65 = dma.hbm_to_vmem [thread:$0]  %s1776_s3, 1024, %s60_s21, [#allocation8], %s1554_s16, %s1554_s16, %s1555_s17  }
  0x1b   :  { %s1411_s1 = scalar_lea.vmem %s84_s23, 1024  ;;  %p1416_p11 = scmp.lt.s32.totalorder %s84_s23, %s84_s23 }
  0x1c   :  { %p1412_p10 = scmp.ne.s32.totalorder %s84_s23, %s1411_s1  ;;  %p1417_p12 = scmp.lt.s32.totalorder %s1411_s1, %s1411_s1 }
  0x1e   :  { %p1418_p13 = por %p1417_p12, %p1416_p11 }
  0x20   :  { %p1419_p0 = pnand %p1418_p13, %p1412_p10 }
  0x22   :  { %1422 = shalt.err (!%p1419_p0)
}
  0x23   :  { %89 = dma.hbm_to_vmem [thread:$0]  %s1778_s5, 1024, %s84_s23, [#allocation11], %s1554_s16, %s1554_s16, %s1555_s17  }
  0x24   :  { %s1558_s29 = smov [#allocation13]   ;;  %s1559_s11 = smov [#allocation2]  }
  0x25   :  { %s107_s30 = sshll.u32 %s1558_s29, 4  ;;  %s26_s3 = sshll.u32 %s1559_s11, 4  ;;  %s108_s30 = int_to_ptr.vmem [resolvable:$true] %s107_s30  ;;  %s27_s3 = int_to_ptr.vmem [resolvable:$true] %s26_s3 }
  0x26   :  { %s1431_s12 = scalar_lea.vmem %s108_s30, 1024  ;;  %p1436_p2 = scmp.lt.s32.totalorder %s108_s30, %s108_s30 }
  0x27   :  { %p1432_p1 = scmp.ne.s32.totalorder %s108_s30, %s1431_s12  ;;  %p1437_p3 = scmp.lt.s32.totalorder %s1431_s12, %s1431_s12 }
  0x29   :  { %p1438_p4 = por %p1437_p3, %p1436_p2 }
  0x2b   :  { %p1439_p5 = pnand %p1438_p4, %p1432_p1 }
  0x2d   :  { %1442 = shalt.err (!%p1439_p5)
}
  0x2e   :  { %113 = dma.hbm_to_vmem [thread:$0]  %s1780_s7, 1024, %s108_s30, [#allocation14], %s1554_s16, %s1554_s16, %s1555_s17  }
  0x2f   :  { %s1451_s5 = scalar_lea.vmem %s27_s3, 128  ;;  %p1456_p7 = scmp.lt.s32.totalorder %s27_s3, %s27_s3 }
  0x30   :  { %p1452_p6 = scmp.ne.s32.totalorder %s27_s3, %s1451_s5  ;;  %p1457_p8 = scmp.lt.s32.totalorder %s1451_s5, %s1451_s5 }
  0x32   :  { %p1458_p9 = por %p1457_p8, %p1456_p7 }
  0x34   :  { %p1459_p10 = pnand %p1458_p9, %p1452_p6 }
  0x36   :  { %1462 = shalt.err (!%p1459_p10)
}
  0x37   :  { %29 = dma.hbm_to_vmem [thread:$0]  %s1773_s0, 128, %s27_s3, [#allocation3]  }
  0x38   :  { %s1560_s19 = smov [#allocation6]   ;;  %s1561_s21 = smov [#allocation9]  }
  0x39   :  { %s47_s20 = sshll.u32 %s1560_s19, 4  ;;  %s71_s22 = sshll.u32 %s1561_s21, 4  ;;  %s48_s20 = int_to_ptr.vmem [resolvable:$true] %s47_s20  ;;  %s72_s22 = int_to_ptr.vmem [resolvable:$true] %s71_s22 }
  0x3a   :  { %s1471_s23 = scalar_lea.vmem %s48_s20, 1024  ;;  %p1476_p12 = scmp.lt.s32.totalorder %s48_s20, %s48_s20 }
  0x3b   :  { %p1472_p11 = scmp.ne.s32.totalorder %s48_s20, %s1471_s23  ;;  %p1477_p13 = scmp.lt.s32.totalorder %s1471_s23, %s1471_s23 }
  0x3d   :  { %p1478_p0 = por %p1477_p13, %p1476_p12 }
  0x3f   :  { %p1479_p1 = pnand %p1478_p0, %p1472_p11 }
  0x41   :  { %1482 = shalt.err (!%p1479_p1)
}
  0x42   :  { %53 = dma.hbm_to_vmem [thread:$0]  %s1775_s2, 1024, %s48_s20, [#allocation5], %s1554_s16, %s1554_s16, %s1555_s17  }
  0x43   :  { %s1491_s0 = scalar_lea.vmem %s72_s22, 1024  ;;  %p1496_p3 = scmp.lt.s32.totalorder %s72_s22, %s72_s22 }
  0x44   :  { %p1492_p2 = scmp.ne.s32.totalorder %s72_s22, %s1491_s0  ;;  %p1497_p4 = scmp.lt.s32.totalorder %s1491_s0, %s1491_s0 }
  0x46   :  { %p1498_p5 = por %p1497_p4, %p1496_p3 }
  0x48   :  { %p1499_p6 = pnand %p1498_p5, %p1492_p2 }
  0x4a   :  { %1502 = shalt.err (!%p1499_p6)
}
  0x4b   :  { %77 = dma.hbm_to_vmem [thread:$0]  %s1777_s4, 1024, %s72_s22, [#allocation8], %s1554_s16, %s1554_s16, %s1555_s17  }
  0x4c   :  { %s1562_s1 = smov [#allocation12]   ;;  %s1563_s28 = smov [#allocation15]  }
  0x4d   :  { %s95_s27 = sshll.u32 %s1562_s1, 4  ;;  %s119_s2 = sshll.u32 %s1563_s28, 4  ;;  %s96_s27 = int_to_ptr.vmem [resolvable:$true] %s95_s27  ;;  %s120_s2 = int_to_ptr.vmem [resolvable:$true] %s119_s2 }
  0x4e   :  { %s1511_s29 = scalar_lea.vmem %s96_s27, 1024  ;;  %p1516_p8 = scmp.lt.s32.totalorder %s96_s27, %s96_s27 }
  0x4f   :  { %p1512_p7 = scmp.ne.s32.totalorder %s96_s27, %s1511_s29  ;;  %p1517_p9 = scmp.lt.s32.totalorder %s1511_s29, %s1511_s29 }
  0x51   :  { %p1518_p10 = por %p1517_p9, %p1516_p8 }
  0x53   :  { %p1519_p11 = pnand %p1518_p10, %p1512_p7 }
  0x55   :  { %1522 = shalt.err (!%p1519_p11)
}
  0x56   :  { %101 = dma.hbm_to_vmem [thread:$0]  %s1779_s6, 1024, %s96_s27, [#allocation11], %s1554_s16, %s1554_s16, %s1555_s17  }
  0x57   :  { %s1531_s4 = scalar_lea.vmem %s120_s2, 1024  ;;  %p1536_p13 = scmp.lt.s32.totalorder %s120_s2, %s120_s2 }
  0x58   :  { %p1532_p12 = scmp.ne.s32.totalorder %s120_s2, %s1531_s4  ;;  %p1537_p0 = scmp.lt.s32.totalorder %s1531_s4, %s1531_s4 }
  0x5a   :  { %p1538_p1 = por %p1537_p0, %p1536_p13 }
  0x5c   :  { %p1539_p2 = pnand %p1538_p1, %p1532_p12 }
  0x5e   :  { %1542 = shalt.err (!%p1539_p2)
}
  0x5f   :  { %125 = dma.hbm_to_vmem [thread:$0]  %s1781_s8, 1024, %s120_s2, [#allocation14], %s1554_s16, %s1554_s16, %s1555_s17  }
  0x60   :  { %1543 = dma.done.wait [#allocation3], 128  }
  0x61   :  { %1544 = vsyncadd [#allocation3], 4294967168 }
  0x62   :  { %1545 = dma.done.wait [#allocation5], 1280  }
  0x63   :  { %1546 = vsyncadd [#allocation5], 4294966016 }
  0x64   :  { %1547 = dma.done.wait [#allocation8], 2048  }
  0x65   :  { %1548 = vsyncadd [#allocation8], 4294965248 }
  0x66   :  { %1549 = dma.done.wait [#allocation11], 2048  }
  0x67   :  { %1550 = vsyncadd [#allocation11], 4294965248 }
  0x68   :  { %1551 = dma.done.wait [#allocation14], 2048  }
  0x69   :  { %1552 = vsyncadd [#allocation14], 4294965248  ;;  %v1564_v0 = vmov 0.0   ;;  %vm1565_vm0 = vmmov 0   ;;  %v1305_v1 = vld [vmem:[#allocation4 + $0x8] sm:$0xff]   ;;  %v1306_v2 = vld [vmem:[#allocation4] sm:$0xff]  }
  0x6a   :  { %1144 = vmatprep.subr.bf16.mxu0 %v1564_v0  ;;  %1148 = vmatprep.mubr.msk.bf16.mxu0 %vm1565_vm0, %v1564_v0  ;;  %v156_v3 = vld [vmem:[#allocation2] sm:$0xff]  ;;  %v1307_v4 = vld [vmem:[#allocation6 + $0x38] sm:$0xff]   ;;  %v1308_v6 = vld [vmem:[#allocation6 + $0x30] sm:$0xff]   ;;  %vm179_vm1 = vcmask 261120  }
  0x6b   :  { %1152 = vmatprep.subr.bf16.mxu1 %v1564_v0  ;;  %1168 = vmatprep.mubr.msk.bf16.mxu1 %vm1565_vm0, %v1564_v0  ;;  %v157_v5 = vpack.c.bf16 %v156_v3, %v156_v3  ;;  %v1309_v7 = vld [vmem:[#allocation6 + $0x28] sm:$0xff]   ;;  %v1310_v8 = vld [vmem:[#allocation6 + $0x20] sm:$0xff]   ;;  %v1311_v9 = vld [vmem:[#allocation6 + $0x18] sm:$0xff]  }
  0x6c   :  { %1145 = vmatpush3.bf16.msra.mxu0 %v1305_v1  ;;  %1153 = vmatpush3.bf16.msra.mxu1 %v1307_v4  ;;  %v1312_v10 = vld [vmem:[#allocation6 + $0x10] sm:$0xff]   ;;  %v1313_v11 = vld [vmem:[#allocation6 + $0x8] sm:$0xff]   ;;  %v1314_v12 = vld [vmem:[#allocation6] sm:$0xff]  }
  0x6d   :  { %1146 = vmatprep.subr.bf16.mxu0 %v1564_v0  ;;  %1154 = vmatprep.subr.bf16.mxu1 %v1564_v0  ;;  %v1315_v13 = vld [vmem:[#allocation7 + $0x38] sm:$0xff]   ;;  %v1316_v14 = vld [vmem:[#allocation7 + $0x30] sm:$0xff]   ;;  %v1317_v15 = vld [vmem:[#allocation7 + $0x28] sm:$0xff]  }
  0x6e   :  { %v1318_v16 = vld [vmem:[#allocation7 + $0x20] sm:$0xff]   ;;  %v1319_v17 = vld [vmem:[#allocation7 + $0x18] sm:$0xff]   ;;  %v1320_v18 = vld [vmem:[#allocation7 + $0x10] sm:$0xff]  }
  0x6f   :  { %v1011_v19 = vld [vmem:[%s1782_s9] ss:$0 sm:$0xff]  ;;  %v1322_v28 = vld [vmem:[#allocation7] sm:$0xff]   ;;  %v1323_v29 = vld [vmem:[#allocation9 + $0x38] sm:$0xff]  }
  0x70   :  { %1147 = vmatpush3.bf16.msra.mxu0 %v1306_v2  ;;  %1155 = vmatpush3.bf16.msra.mxu1 %v1308_v6  ;;  %v1321_v27 = vld [vmem:[#allocation7 + $0x8] sm:$0xff]   ;;  %v1324_v30 = vld [vmem:[#allocation9 + $0x30] sm:$0xff]   ;;  %v1326_v32 = vld [vmem:[#allocation9 + $0x20] sm:$0xff]  }
  0x71   :  { %1172 = vmatprep.subr.bf16.mxu0 %v1564_v0  ;;  %1156 = vmatprep.subr.bf16.mxu1 %v1564_v0  ;;  %v1325_v31 = vld [vmem:[#allocation9 + $0x28] sm:$0xff]   ;;  %v1327_v33 = vld [vmem:[#allocation9 + $0x18] sm:$0xff]   ;;  %v1328_v34 = vld [vmem:[#allocation9 + $0x10] sm:$0xff]  }
  0x72   :  { %v1015_v35 = vld [vmem:[%s1782_s9 + $0x1] ss:$0 sm:$0xff]  ;;  %v1330_v44 = vld [vmem:[#allocation9] sm:$0xff]   ;;  %v1331_v45 = vld [vmem:[#allocation10 + $0x38] sm:$0xff]  }
  0x73   :  { %1149 = vmatmul.mubr.msk.bf16.vlgmr.msra.gmra.mxu0 %vm179_vm1, %v157_v5  ;;  %v1329_v43 = vld [vmem:[#allocation9 + $0x8] sm:$0xff]   ;;  %v1332_v46 = vld [vmem:[#allocation10 + $0x30] sm:$0xff]   ;;  %v1334_v48 = vld [vmem:[#allocation10 + $0x20] sm:$0xff]  }
  0x74   :  { %1188 = vmatprep.mubr.msk.bf16.mxu0 %vm1565_vm0, %v1564_v0  ;;  %1157 = vmatpush3.bf16.msra.mxu1 %v1309_v7  ;;  %v1333_v47 = vld [vmem:[#allocation10 + $0x28] sm:$0xff]   ;;  %v1335_v49 = vld [vmem:[#allocation10 + $0x18] sm:$0xff]   ;;  %v1336_v50 = vld [vmem:[#allocation10 + $0x10] sm:$0xff]  }
  0x75   :  { %1158 = vmatprep.subr.bf16.mxu1 %v1564_v0  ;;  %1173 = vmatpush3.bf16.msra.mxu0 %v1315_v13  ;;  %v1024_v51 = vld [vmem:[%s1782_s9 + $0x2] ss:$0 sm:$0xff]  ;;  %v1338_v60 = vld [vmem:[#allocation10] sm:$0xff]   ;;  %v1339_v61 = vld [vmem:[#allocation12 + $0x38] sm:$0xff]  }
  0x76   :  { %1174 = vmatprep.subr.bf16.mxu0 %v1564_v0  ;;  %v1337_v59 = vld [vmem:[#allocation10 + $0x8] sm:$0xff]   ;;  %v1340_v62 = vld [vmem:[#allocation12 + $0x30] sm:$0xff]   ;;  %v1342_v1 = vld [vmem:[#allocation12 + $0x20] sm:$0xff]  }
  0x77   :  { %v1341_v63 = vld [vmem:[#allocation12 + $0x28] sm:$0xff]   ;;  %v1343_v2 = vld [vmem:[#allocation12 + $0x18] sm:$0xff]   ;;  %v1344_v3 = vld [vmem:[#allocation12 + $0x10] sm:$0xff]  }
  0x78   :  { %1159 = vmatpush3.bf16.msra.mxu1 %v1310_v8  ;;  %v1033_v4 = vld [vmem:[%s1782_s9 + $0x3] ss:$0 sm:$0xff]  ;;  %v1346_v13 = vld [vmem:[#allocation12] sm:$0xff]  }
  0x79   :  { %1160 = vmatprep.subr.bf16.mxu1 %v1564_v0  ;;  %1175 = vmatpush3.bf16.msra.mxu0 %v1316_v14  ;;  %v1347_v14 = vld [vmem:[#allocation13 + $0x38] sm:$0xff]  }
  0x7a   :  { %1176 = vmatprep.subr.bf16.mxu0 %v1564_v0 }
  0x7c   :  { %1161 = vmatpush3.bf16.msra.mxu1 %v1311_v9 }
  0x7d   :  { %1162 = vmatprep.subr.bf16.mxu1 %v1564_v0  ;;  %1177 = vmatpush3.bf16.msra.mxu0 %v1317_v15  ;;  %v1348_v15 = vld [vmem:[#allocation13 + $0x30] sm:$0xff]  }
  0x7e   :  { %1178 = vmatprep.subr.bf16.mxu0 %v1564_v0 }
  0x80   :  { %1163 = vmatpush3.bf16.msra.mxu1 %v1312_v10 }
  0x81   :  { %1164 = vmatprep.subr.bf16.mxu1 %v1564_v0  ;;  %1179 = vmatpush3.bf16.msra.mxu0 %v1318_v16  ;;  %v1349_v16 = vld [vmem:[#allocation13 + $0x28] sm:$0xff]  }
  0x82   :  { %1180 = vmatprep.subr.bf16.mxu0 %v1564_v0 }
  0x84   :  { %1165 = vmatpush3.bf16.msra.mxu1 %v1313_v11 }
  0x85   :  { %1166 = vmatprep.subr.bf16.mxu1 %v1564_v0  ;;  %1181 = vmatpush3.bf16.msra.mxu0 %v1319_v17  ;;  %v1350_v17 = vld [vmem:[#allocation13 + $0x20] sm:$0xff]  }
  0x86   :  { %1182 = vmatprep.subr.bf16.mxu0 %v1564_v0 }
  0x88   :  { %1167 = vmatpush3.bf16.msra.mxu1 %v1314_v12  ;;  %v1345_v12 = vld [vmem:[#allocation12 + $0x8] sm:$0xff]  }
  0x89   :  { %1192 = vmatprep.subr.bf16.mxu1 %v1564_v0  ;;  %1183 = vmatpush3.bf16.msra.mxu0 %v1320_v18  ;;  %v1351_v18 = vld [vmem:[#allocation13 + $0x18] sm:$0xff]  }
  0x8a   :  { %1184 = vmatprep.subr.bf16.mxu0 %v1564_v0 }
  0x8d   :  { %1185 = vmatpush3.bf16.msra.mxu0 %v1321_v27 }
  0x8e   :  { %1186 = vmatprep.subr.bf16.mxu0 %v1564_v0 }
  0x91   :  { %1187 = vmatpush3.bf16.msra.mxu0 %v1322_v28  ;;  %v1353_v28 = vld [vmem:[#allocation13 + $0x8] sm:$0xff]  }
  0x92   :  { %1212 = vmatprep.subr.bf16.mxu0 %v1564_v0 }
 0x133   :  { %v217_v20 = vpop.f32.mrf.mxu0 }
 0x134   :  { %v218_v21 = vadd.f32 %v1011_v19, %v217_v20  ;;  %v1352_v19 = vld [vmem:[#allocation13 + $0x10] sm:$0xff]   ;;  %v1042_v20 = vld [vmem:[%s1782_s9 + $0x4] ss:$0 sm:$0xff] }
 0x135   :  { %v1150_v22 = vpop.f32.mrf.mxu0 }
 0x136   :  { %v223_v23 = vmax.f32 %v218_v21, 0.0 }
 0x137   :  { %v220_v24 = vpop.f32.mrf.mxu0 }
 0x138   :  { %v224_v25 = vpack.c.bf16 %v223_v23, %v223_v23 }
 0x139   :  { %v1151_v26 = vpop.f32.mrf.mxu0 }
 0x13a   :  { %1169 = vmatmul.mubr.bf16.vlgmr.msra.gmra.mxu1 %v224_v25 }
 0x13b   :  { %1208 = vmatprep.mubr.msk.bf16.mxu1 %vm1565_vm0, %v1564_v0  ;;  %1193 = vmatpush3.bf16.msra.mxu1 %v1323_v29  ;;  %v1354_v29 = vld [vmem:[#allocation13] sm:$0xff]  }
 0x13c   :  { %1194 = vmatprep.subr.bf16.mxu1 %v1564_v0 }
 0x13f   :  { %1195 = vmatpush3.bf16.msra.mxu1 %v1324_v30  ;;  %v1355_v30 = vld [vmem:[#allocation15 + $0x38] sm:$0xff]  }
 0x140   :  { %1196 = vmatprep.subr.bf16.mxu1 %v1564_v0 }
 0x143   :  { %1197 = vmatpush3.bf16.msra.mxu1 %v1325_v31  ;;  %v1356_v31 = vld [vmem:[#allocation15 + $0x30] sm:$0xff]  }
 0x144   :  { %1198 = vmatprep.subr.bf16.mxu1 %v1564_v0 }
 0x147   :  { %1199 = vmatpush3.bf16.msra.mxu1 %v1326_v32  ;;  %v1357_v32 = vld [vmem:[#allocation15 + $0x28] sm:$0xff]  }
 0x148   :  { %1200 = vmatprep.subr.bf16.mxu1 %v1564_v0 }
 0x14b   :  { %1201 = vmatpush3.bf16.msra.mxu1 %v1327_v33  ;;  %v1358_v33 = vld [vmem:[#allocation15 + $0x20] sm:$0xff]  }
 0x14c   :  { %1202 = vmatprep.subr.bf16.mxu1 %v1564_v0 }
 0x14f   :  { %1203 = vmatpush3.bf16.msra.mxu1 %v1328_v34  ;;  %v1359_v34 = vld [vmem:[#allocation15 + $0x18] sm:$0xff]  }
 0x150   :  { %1204 = vmatprep.subr.bf16.mxu1 %v1564_v0 }
 0x153   :  { %1205 = vmatpush3.bf16.msra.mxu1 %v1329_v43 }
 0x154   :  { %1206 = vmatprep.subr.bf16.mxu1 %v1564_v0 }
 0x157   :  { %1207 = vmatpush3.bf16.msra.mxu1 %v1330_v44  ;;  %v1361_v44 = vld [vmem:[#allocation15 + $0x8] sm:$0xff]  }
 0x158   :  { %1232 = vmatprep.subr.bf16.mxu1 %v1564_v0 }
 0x1fa   :  { %v328_v36 = vpop.f32.mrf.mxu1 }
 0x1fb   :  { %v329_v37 = vadd.f32 %v1015_v35, %v328_v36  ;;  %v1360_v35 = vld [vmem:[#allocation15 + $0x10] sm:$0xff]   ;;  %v1051_v36 = vld [vmem:[%s1782_s9 + $0x5] ss:$0 sm:$0xff] }
 0x1fc   :  { %v1170_v38 = vpop.f32.mrf.mxu1 }
 0x1fd   :  { %v334_v39 = vmax.f32 %v329_v37, 0.0 }
 0x1fe   :  { %v331_v40 = vpop.f32.mrf.mxu1 }
 0x1ff   :  { %v335_v41 = vpack.c.bf16 %v334_v39, %v334_v39 }
 0x200   :  { %v1171_v42 = vpop.f32.mrf.mxu1 }
 0x201   :  { %1189 = vmatmul.mubr.bf16.vlgmr.msra.gmra.mxu0 %v335_v41 }
 0x202   :  { %1228 = vmatprep.mubr.msk.bf16.mxu0 %vm1565_vm0, %v1564_v0  ;;  %1213 = vmatpush3.bf16.msra.mxu0 %v1331_v45  ;;  %v1362_v45 = vld [vmem:[#allocation15] sm:$0xff]  }
 0x203   :  { %1214 = vmatprep.subr.bf16.mxu0 %v1564_v0 }
 0x206   :  { %1215 = vmatpush3.bf16.msra.mxu0 %v1332_v46  ;;  %v1060_v46 = vld [vmem:[%s1782_s9 + $0x6] ss:$0 sm:$0xff] }
 0x207   :  { %1216 = vmatprep.subr.bf16.mxu0 %v1564_v0 }
 0x20a   :  { %1217 = vmatpush3.bf16.msra.mxu0 %v1333_v47 }
 0x20b   :  { %1218 = vmatprep.subr.bf16.mxu0 %v1564_v0 }
 0x20e   :  { %1219 = vmatpush3.bf16.msra.mxu0 %v1334_v48 }
 0x20f   :  { %1220 = vmatprep.subr.bf16.mxu0 %v1564_v0 }
 0x212   :  { %1221 = vmatpush3.bf16.msra.mxu0 %v1335_v49 }
 0x213   :  { %1222 = vmatprep.subr.bf16.mxu0 %v1564_v0 }
 0x216   :  { %1223 = vmatpush3.bf16.msra.mxu0 %v1336_v50 }
 0x217   :  { %1224 = vmatprep.subr.bf16.mxu0 %v1564_v0 }
 0x21a   :  { %1225 = vmatpush3.bf16.msra.mxu0 %v1337_v59 }
 0x21b   :  { %1226 = vmatprep.subr.bf16.mxu0 %v1564_v0 }
 0x21e   :  { %1227 = vmatpush3.bf16.msra.mxu0 %v1338_v60 }
 0x21f   :  { %1252 = vmatprep.subr.bf16.mxu0 %v1564_v0 }
 0x2c1   :  { %v439_v52 = vpop.f32.mrf.mxu0 }
 0x2c2   :  { %v440_v53 = vadd.f32 %v1024_v51, %v439_v52 }
 0x2c3   :  { %v1190_v54 = vpop.f32.mrf.mxu0 }
 0x2c4   :  { %v445_v55 = vmax.f32 %v440_v53, 0.0  ;;  %v1069_v54 = vld [vmem:[%s1782_s9 + $0x7] ss:$0 sm:$0xff] }
 0x2c5   :  { %v442_v56 = vpop.f32.mrf.mxu0 }
 0x2c6   :  { %v446_v57 = vpack.c.bf16 %v445_v55, %v445_v55 }
 0x2c7   :  { %v1191_v58 = vpop.f32.mrf.mxu0 }
 0x2c8   :  { %1209 = vmatmul.mubr.bf16.vlgmr.msra.gmra.mxu1 %v446_v57 }
 0x2c9   :  { %1248 = vmatprep.mubr.msk.bf16.mxu1 %vm1565_vm0, %v1564_v0  ;;  %1233 = vmatpush3.bf16.msra.mxu1 %v1339_v61 }
 0x2ca   :  { %1234 = vmatprep.subr.bf16.mxu1 %v1564_v0 }
 0x2cd   :  { %1235 = vmatpush3.bf16.msra.mxu1 %v1340_v62 }
 0x2ce   :  { %1236 = vmatprep.subr.bf16.mxu1 %v1564_v0 }
 0x2d1   :  { %1237 = vmatpush3.bf16.msra.mxu1 %v1341_v63 }
 0x2d2   :  { %1238 = vmatprep.subr.bf16.mxu1 %v1564_v0 }
 0x2d5   :  { %1239 = vmatpush3.bf16.msra.mxu1 %v1342_v1 }
 0x2d6   :  { %1240 = vmatprep.subr.bf16.mxu1 %v1564_v0 }
 0x2d9   :  { %1241 = vmatpush3.bf16.msra.mxu1 %v1343_v2 }
 0x2da   :  { %1242 = vmatprep.subr.bf16.mxu1 %v1564_v0 }
 0x2dd   :  { %1243 = vmatpush3.bf16.msra.mxu1 %v1344_v3 }
 0x2de   :  { %1244 = vmatprep.subr.bf16.mxu1 %v1564_v0 }
 0x2e1   :  { %1245 = vmatpush3.bf16.msra.mxu1 %v1345_v12 }
 0x2e2   :  { %1246 = vmatprep.subr.bf16.mxu1 %v1564_v0 }
 0x2e5   :  { %1247 = vmatpush3.bf16.msra.mxu1 %v1346_v13 }
 0x2e6   :  { %1272 = vmatprep.subr.bf16.mxu1 %v1564_v0 }
 0x388   :  { %v550_v5 = vpop.f32.mrf.mxu1 }
 0x389   :  { %v551_v6 = vadd.f32 %v1033_v4, %v550_v5 }
 0x38a   :  { %v1210_v7 = vpop.f32.mrf.mxu1 }
 0x38b   :  { %v556_v8 = vmax.f32 %v551_v6, 0.0 }
 0x38c   :  { %v553_v9 = vpop.f32.mrf.mxu1 }
 0x38d   :  { %v557_v10 = vpack.c.bf16 %v556_v8, %v556_v8 }
 0x38e   :  { %v1211_v11 = vpop.f32.mrf.mxu1 }
 0x38f   :  { %1229 = vmatmul.mubr.bf16.vlgmr.msra.gmra.mxu0 %v557_v10 }
 0x390   :  { %1268 = vmatprep.mubr.msk.bf16.mxu0 %vm1565_vm0, %v1564_v0  ;;  %1253 = vmatpush3.bf16.msra.mxu0 %v1347_v14 }
 0x391   :  { %1254 = vmatprep.subr.bf16.mxu0 %v1564_v0 }
 0x394   :  { %1255 = vmatpush3.bf16.msra.mxu0 %v1348_v15 }
 0x395   :  { %1256 = vmatprep.subr.bf16.mxu0 %v1564_v0 }
 0x398   :  { %1257 = vmatpush3.bf16.msra.mxu0 %v1349_v16 }
 0x399   :  { %1258 = vmatprep.subr.bf16.mxu0 %v1564_v0 }
 0x39c   :  { %1259 = vmatpush3.bf16.msra.mxu0 %v1350_v17 }
 0x39d   :  { %1260 = vmatprep.subr.bf16.mxu0 %v1564_v0 }
 0x3a0   :  { %1261 = vmatpush3.bf16.msra.mxu0 %v1351_v18 }
 0x3a1   :  { %1262 = vmatprep.subr.bf16.mxu0 %v1564_v0 }
 0x3a4   :  { %1263 = vmatpush3.bf16.msra.mxu0 %v1352_v19 }
 0x3a5   :  { %1264 = vmatprep.subr.bf16.mxu0 %v1564_v0 }
 0x3a8   :  { %1265 = vmatpush3.bf16.msra.mxu0 %v1353_v28 }
 0x3a9   :  { %1266 = vmatprep.subr.bf16.mxu0 %v1564_v0 }
 0x3ac   :  { %1267 = vmatpush3.bf16.msra.mxu0 %v1354_v29 }
 0x44f   :  { %v661_v21 = vpop.f32.mrf.mxu0 }
 0x450   :  { %v662_v22 = vadd.f32 %v1042_v20, %v661_v21 }
 0x451   :  { %v1230_v23 = vpop.f32.mrf.mxu0 }
 0x452   :  { %v667_v24 = vmax.f32 %v662_v22, 0.0 }
 0x453   :  { %v664_v25 = vpop.f32.mrf.mxu0 }
 0x454   :  { %v668_v26 = vpack.c.bf16 %v667_v24, %v667_v24 }
 0x455   :  { %v1231_v27 = vpop.f32.mrf.mxu0 }
 0x456   :  { %1249 = vmatmul.mubr.bf16.vlgmr.msra.gmra.mxu1 %v668_v26 }
 0x457   :  { %1288 = vmatprep.mubr.msk.bf16.mxu1 %vm1565_vm0, %v1564_v0  ;;  %1273 = vmatpush3.bf16.msra.mxu1 %v1355_v30 }
 0x458   :  { %1274 = vmatprep.subr.bf16.mxu1 %v1564_v0 }
 0x45b   :  { %1275 = vmatpush3.bf16.msra.mxu1 %v1356_v31 }
 0x45c   :  { %1276 = vmatprep.subr.bf16.mxu1 %v1564_v0 }
 0x45f   :  { %1277 = vmatpush3.bf16.msra.mxu1 %v1357_v32 }
 0x460   :  { %1278 = vmatprep.subr.bf16.mxu1 %v1564_v0 }
 0x463   :  { %1279 = vmatpush3.bf16.msra.mxu1 %v1358_v33 }
 0x464   :  { %1280 = vmatprep.subr.bf16.mxu1 %v1564_v0 }
 0x467   :  { %1281 = vmatpush3.bf16.msra.mxu1 %v1359_v34 }
 0x468   :  { %1282 = vmatprep.subr.bf16.mxu1 %v1564_v0 }
 0x46b   :  { %1283 = vmatpush3.bf16.msra.mxu1 %v1360_v35 }
 0x46c   :  { %1284 = vmatprep.subr.bf16.mxu1 %v1564_v0 }
 0x46f   :  { %1285 = vmatpush3.bf16.msra.mxu1 %v1361_v44 }
 0x470   :  { %1286 = vmatprep.subr.bf16.mxu1 %v1564_v0 }
 0x473   :  { %1287 = vmatpush3.bf16.msra.mxu1 %v1362_v45 }
 0x516   :  { %v772_v37 = vpop.f32.mrf.mxu1 }
 0x517   :  { %v773_v38 = vadd.f32 %v1051_v36, %v772_v37 }
 0x518   :  { %v1250_v39 = vpop.f32.mrf.mxu1 }
 0x519   :  { %v778_v40 = vmax.f32 %v773_v38, 0.0 }
 0x51a   :  { %v775_v41 = vpop.f32.mrf.mxu1 }
 0x51b   :  { %v779_v42 = vpack.c.bf16 %v778_v40, %v778_v40 }
 0x51c   :  { %v1251_v43 = vpop.f32.mrf.mxu1 }
 0x51d   :  { %1269 = vmatmul.mubr.bf16.vlgmr.msra.gmra.mxu0 %v779_v42 }
 0x5dd   :  { %v883_v47 = vpop.f32.mrf.mxu0 }
 0x5de   :  { %v884_v48 = vadd.f32 %v1060_v46, %v883_v47 }
 0x5df   :  { %v1270_v49 = vpop.f32.mrf.mxu0 }
 0x5e0   :  { %v889_v50 = vmax.f32 %v884_v48, 0.0 }
 0x5e1   :  { %v886_v51 = vpop.f32.mrf.mxu0 }
 0x5e2   :  { %v890_v52 = vpack.c.bf16 %v889_v50, %v889_v50 }
 0x5e3   :  { %v1271_v53 = vpop.f32.mrf.mxu0 }
 0x5e4   :  { %1289 = vmatmul.mubr.bf16.vlgmr.msra.gmra.mxu1 %v890_v52 }
 0x6a4   :  { %v994_v55 = vpop.f32.mrf.mxu1 }
 0x6a5   :  { %v995_v0 = vadd.f32 %v1069_v54, %v994_v55 }
 0x6a6   :  { %v1290_v56 = vpop.f32.mrf.mxu1 }
 0x6a7   :  { %v1000_v57 = vpack.c.bf16 %v995_v0, %v995_v0 }
 0x6a8   :  { %v997_v58 = vpop.f32.mrf.mxu1 }
 0x6a9   :  { %1001 = vst [vmem:[%s1783_s10] sm:$0xf] %v1000_v57 }
 0x6aa   :  { %v1291_v59 = vpop.f32.mrf.mxu1 }
 0x6ab   :  { %1006 = vsyncpa [#allocation3], 1 }
 0x6ac   :  { %1007 = vsyncpa [#allocation5], 1 }
 0x6ad   :  { %1008 = vsyncpa [#allocation8], 1 }
 0x6ae   :  { %1009 = vsyncpa [#allocation11], 1 }
 0x6af   :  { %1010 = vsyncpa [#allocation14], 1 }

</bundles_post_ra>
